<compile_context>
chip_gen: v5e
topology: v5e:2x2
jax: 0.10.0
libtpu: 0.0.40
codegen_flags: <defaults>
</compile_context>

<pallas_src>
import math

import jax
import jax.numpy as jnp
from jax import lax
from jax.experimental import pallas as pl
from jax.experimental.pallas import tpu as pltpu


def cerebral_kernel(x_ref, m_ref, w_ref, c_ref, bint_ref, lnw_ref, lnb_ref, o_ref):
    x = x_ref[...]                                   # (C, TL) f32, pixels on lanes
    m = m_ref[...]                                   # (1, TL) f32 fractal mask
    C = x.shape[0]

    # Single fused MXU matmul: (4C, C)bf16 @ (C, TL)bf16 -> (4C, TL)f32.
    y = jnp.dot(w_ref[...], x.astype(jnp.bfloat16),
                preferred_element_type=jnp.float32)
    y = y + c_ref[...]                               # per-(branch, channel) bias

    # Per-branch per-pixel scalar factors, lane-dense (1, TL).
    fa = m                                           # alpha:  mask
    fb = 1.0 - m                                     # beta:   1 - mask
    fg = 0.5 * m                                     # gamma:  0.5 * mask
    ft = jnp.sin(m * math.pi)                        # theta:  sin(pi * mask)

    integ = (fa * y[0 * C:1 * C]
             + fb * y[1 * C:2 * C]
             + fg * y[2 * C:3 * C]
             + ft * y[3 * C:4 * C]) + bint_ref[...]  # (C, TL)

    # One-pass LayerNorm over the channel (sublane) axis, eps = 1e-5.
    inv_c = 1.0 / C
    mean = jnp.sum(integ, axis=0, keepdims=True) * inv_c          # (1, TL)
    msq = jnp.sum(integ * integ, axis=0, keepdims=True) * inv_c   # (1, TL)
    var = msq - mean * mean
    scale = lax.rsqrt(var + 1e-5) * lnw_ref[...]                  # (C, TL) via bcast
    norm = (integ - mean) * scale + lnb_ref[...]

    # Residual.
    o_ref[...] = (norm + x).astype(o_ref.dtype)


def cerebral_dynamics_forward(x_nchw, fractal_pattern, kparams, *, tile_hw=2048):
    """x_nchw: (B, C, H, W) f32; fractal_pattern: (H, W) f32 (input resolution)."""
    B, C, H, W = x_nchw.shape
    assert C % 4 == 0, "channels must be divisible by 4"
    # TODO(synk): no bilinear resize of the pattern; must match input H, W.
    assert fractal_pattern.shape == (H, W)
    HW = H * W

    # Lane tile: multiple of 128, capped so the (4C, TL) f32 matmul output stays
    # around <= 8 MiB of VMEM-resident intermediate (re-derived for v7x's
    # smaller VMEM too), and clipped to the (128-padded) spatial extent.
    cap = max(128, ((8 * 1024 * 1024) // (16 * C)) // 128 * 128)
    tl = max(128, min(int(tile_hw), cap))
    tl = (tl // 128) * 128
    hw128 = pl.cdiv(HW, 128) * 128
    tl = min(tl, hw128)
    hw_pad = pl.cdiv(HW, tl) * tl

    x3 = x_nchw.reshape(B, C, HW)                     # free reshape (no transpose)
    m2 = fractal_pattern.reshape(1, HW)
    if hw_pad != HW:
        x3 = jnp.pad(x3, ((0, 0), (0, 0), (0, hw_pad - HW)))
        m2 = jnp.pad(m2, ((0, 0), (0, hw_pad - HW)))

    grid = (B, hw_pad // tl)

    # Rough scheduling hints for XLA around this (memory-bound) kernel.
    flops = 2 * B * hw_pad * 4 * C * C + 14 * B * hw_pad * C
    transcendentals = 2 * B * hw_pad                  # sin + rsqrt per pixel
    bytes_accessed = (2 * B * hw_pad * C * 4          # x in + out (f32)
                      + B * hw_pad * 4                # mask stream
                      + 4 * C * C * 2 + (4 * C + 3 * C) * 4)

    out3 = pl.pallas_call(
        cerebral_kernel,
        out_shape=jax.ShapeDtypeStruct((B, C, hw_pad), jnp.float32),
        grid_spec=pltpu.PrefetchScalarGridSpec(
            num_scalar_prefetch=0,
            grid=grid,
            in_specs=[
                pl.BlockSpec((None, C, tl), lambda b, j: (b, 0, j)),   # x block
                pl.BlockSpec((1, tl), lambda b, j: (0, j)),            # mask block
                pl.BlockSpec((4 * C, C), lambda b, j: (0, 0)),         # fused weights
                pl.BlockSpec((4 * C, 1), lambda b, j: (0, 0)),         # fused band bias
                pl.BlockSpec((C, 1), lambda b, j: (0, 0)),             # integration bias
                pl.BlockSpec((C, 1), lambda b, j: (0, 0)),             # ln weight
                pl.BlockSpec((C, 1), lambda b, j: (0, 0)),             # ln bias
            ],
            out_specs=pl.BlockSpec((None, C, tl), lambda b, j: (b, 0, j)),
        ),
        compiler_params=pltpu.CompilerParams(
            dimension_semantics=("parallel", "parallel")),
        cost_estimate=pl.CostEstimate(
            flops=flops, transcendentals=transcendentals,
            bytes_accessed=bytes_accessed),
    )(x3, m2, kparams["w_stack"], kparams["c_stack"],
      kparams["b_int"], kparams["ln_w"], kparams["ln_b"])

    out = out3[:, :, :HW].reshape(B, C, H, W)
    return out


def make_params(key, channels):
    """Synthetic parameters mirroring the PyTorch module's tensors (f32)."""
    C = channels
    q = C // 4
    ks = jax.random.split(key, 12)
    scale = 1.0 / math.sqrt(C)
    return {
        # Conv2d(C, C//4, 1) per band: weight (out=q, in=C), bias (q,)
        "w_a": jax.random.normal(ks[0], (q, C), jnp.float32) * scale,
        "w_b": jax.random.normal(ks[1], (q, C), jnp.float32) * scale,
        "w_g": jax.random.normal(ks[2], (q, C), jnp.float32) * scale,
        "w_t": jax.random.normal(ks[3], (q, C), jnp.float32) * scale,
        "b_a": jax.random.normal(ks[4], (q,), jnp.float32) * scale,
        "b_b": jax.random.normal(ks[5], (q,), jnp.float32) * scale,
        "b_g": jax.random.normal(ks[6], (q,), jnp.float32) * scale,
        "b_t": jax.random.normal(ks[7], (q,), jnp.float32) * scale,
        # Integration Conv2d(C, C, 1): weight (out=C, in=C), bias (C,)
        "w_i": jax.random.normal(ks[8], (C, C), jnp.float32) * scale,
        "b_i": jax.random.normal(ks[9], (C,), jnp.float32) * scale,
        # LayerNorm([C]) affine
        "ln_w": jnp.ones((C,), jnp.float32)
                + 0.1 * jax.random.normal(ks[10], (C,), jnp.float32),
        "ln_b": 0.1 * jax.random.normal(ks[11], (C,), jnp.float32),
    }


def prepare_kernel_params(p, channels):
    """Fuse band convs with the integration conv (exact algebra for 1x1 convs)."""
    C = channels
    q = C // 4
    hi = jax.lax.Precision.HIGHEST
    w_bands = [p["w_a"], p["w_b"], p["w_g"], p["w_t"]]
    b_bands = [p["b_a"], p["b_b"], p["b_g"], p["b_t"]]
    m_blocks, c_blocks = [], []
    for k in range(4):
        wi_k = p["w_i"][:, k * q:(k + 1) * q]                        # (C, q)
        m_blocks.append(jnp.dot(wi_k, w_bands[k], precision=hi))     # (C, C)
        c_blocks.append(jnp.dot(wi_k, b_bands[k], precision=hi))     # (C,)
    w_stack = jnp.concatenate(m_blocks, axis=0)                      # (4C, C)
    c_stack = jnp.concatenate(c_blocks, axis=0)[:, None]             # (4C, 1)
    return {
        "w_stack": w_stack.astype(jnp.bfloat16),   # bf16 MXU inputs, f32 accumulate
        "c_stack": c_stack.astype(jnp.float32),
        "b_int": p["b_i"][:, None].astype(jnp.float32),
        "ln_w": p["ln_w"][:, None].astype(jnp.float32),
        "ln_b": p["ln_b"][:, None].astype(jnp.float32),
    }


def reference_forward(x, fractal_pattern, p):
    """Pure-JAX reference matching the PyTorch module (unfused, f32)."""
    hi = jax.lax.Precision.HIGHEST
    m = fractal_pattern[None, None]                                  # (1,1,H,W)

    def conv1x1(inp, w, b):
        return jnp.einsum("oc,bchw->bohw", w, inp, precision=hi) \
            + b[None, :, None, None]

    alpha = conv1x1(x, p["w_a"], p["b_a"]) * m
    beta = conv1x1(x, p["w_b"], p["b_b"]) * (1.0 - m)
    gamma = conv1x1(x, p["w_g"], p["b_g"]) * m * 0.5
    theta = conv1x1(x, p["w_t"], p["b_t"]) * jnp.sin(m * math.pi)
    combined = jnp.concatenate([alpha, beta, gamma, theta], axis=1)
    integ = conv1x1(combined, p["w_i"], p["b_i"])
    mean = integ.mean(axis=1, keepdims=True)
    var = ((integ - mean) ** 2).mean(axis=1, keepdims=True)
    norm = (integ - mean) / jnp.sqrt(var + 1e-5)
    norm = norm * p["ln_w"][None, :, None, None] + p["ln_b"][None, :, None, None]
    return norm + x


if __name__ == "__main__":
    B, C, H, W = 2, 32, 16, 16   # channels divisible by 4

    key = jax.random.PRNGKey(0)
    kx, kp, km = jax.random.split(key, 3)

    x = jax.random.normal(kx, (B, C, H, W), jnp.float32)
    fractal_pattern = jax.random.uniform(km, (H, W), jnp.float32)   # values in [0, 1)
    params = make_params(kp, C)
    kparams = prepare_kernel_params(params, C)

    out = cerebral_dynamics_forward(x, fractal_pattern, kparams)
    out = jax.block_until_ready(out)

    ref = reference_forward(x, fractal_pattern, params)
    assert out.shape == (B, C, H, W)
    # bf16 MXU inputs (f32 accumulation) + fused-weight reassociation -> relaxed
    # tolerance vs the unfused f32 reference.
    assert jnp.allclose(out, ref, atol=4e-2, rtol=4e-2), "mismatch vs reference"

    print("KERNEL_OK")
</pallas_src>

<mosaic_0001>
module attributes {stable_mosaic.version = 11 : i64} {
  func.func @cerebral_kernel(%arg0: i32, %arg1: i32, %arg2: memref<1x32x256xf32, #tpu.memory_space<vmem>>, %arg3: memref<1x256xf32, #tpu.memory_space<vmem>>, %arg4: memref<128x32xbf16, #tpu.memory_space<vmem>>, %arg5: memref<128x1xf32, #tpu.memory_space<vmem>>, %arg6: memref<32x1xf32, #tpu.memory_space<vmem>>, %arg7: memref<32x1xf32, #tpu.memory_space<vmem>>, %arg8: memref<32x1xf32, #tpu.memory_space<vmem>>, %arg9: memref<1x32x256xf32, #tpu.memory_space<vmem>>) attributes {dimension_semantics = [#tpu.dimension_semantics<parallel>, #tpu.dimension_semantics<parallel>], iteration_bounds = array<i64: 2, 1>, scalar_prefetch = 0 : i64, scratch_operands = 0 : i64, tpu.core_type = #tpu.core_type<tc>, window_params = [{transform_indices = @transform_0, window_bounds = array<i64: 1, 32, 256>}, {transform_indices = @transform_1, window_bounds = array<i64: 1, 256>}, {pipeline_mode = #tpu.pipeline_mode<synchronous>, transform_indices = @transform_2, window_bounds = array<i64: 128, 32>}, {pipeline_mode = #tpu.pipeline_mode<synchronous>, transform_indices = @transform_3, window_bounds = array<i64: 128, 1>}, {pipeline_mode = #tpu.pipeline_mode<synchronous>, transform_indices = @transform_4, window_bounds = array<i64: 32, 1>}, {pipeline_mode = #tpu.pipeline_mode<synchronous>, transform_indices = @transform_5, window_bounds = array<i64: 32, 1>}, {pipeline_mode = #tpu.pipeline_mode<synchronous>, transform_indices = @transform_6, window_bounds = array<i64: 32, 1>}, {transform_indices = @transform_7, window_bounds = array<i64: 1, 32, 256>}]} {
    %c0 = arith.constant 0 : index
    %c0_0 = arith.constant 0 : index
    %c0_1 = arith.constant 0 : index
    %0 = vector.load %arg2[%c0, %c0_0, %c0_1] : memref<1x32x256xf32, #tpu.memory_space<vmem>>, vector<1x32x256xf32>
    %1 = vector.shape_cast %0 : vector<1x32x256xf32> to vector<32x256xf32>
    %c0_2 = arith.constant 0 : index
    %c0_3 = arith.constant 0 : index
    %2 = vector.load %arg3[%c0_2, %c0_3] : memref<1x256xf32, #tpu.memory_space<vmem>>, vector<1x256xf32>
    %c0_4 = arith.constant 0 : index
    %c0_5 = arith.constant 0 : index
    %3 = vector.load %arg4[%c0_4, %c0_5] : memref<128x32xbf16, #tpu.memory_space<vmem>>, vector<128x32xbf16>
    %4 = arith.truncf %1 : vector<32x256xf32> to vector<32x256xbf16>
    %cst = arith.constant dense<0.000000e+00> : vector<128x256xf32>
    %5 = tpu.matmul %3, %4, %cst {dimension_numbers = #tpu.dot_dimension_numbers<[1], [0], [0], [1], [0, 0, 1, 1], [], []>} : vector<128x32xbf16>, vector<32x256xbf16>, vector<128x256xf32> -> vector<128x256xf32>
    %c0_6 = arith.constant 0 : index
    %c0_7 = arith.constant 0 : index
    %6 = vector.load %arg5[%c0_6, %c0_7] : memref<128x1xf32, #tpu.memory_space<vmem>>, vector<128x1xf32>
    %7 = vector.broadcast %6 : vector<128x1xf32> to vector<128x256xf32>
    %8 = arith.addf %5, %7 : vector<128x256xf32>
    %cst_8 = arith.constant 1.000000e+00 : f32
    %9 = vector.broadcast %cst_8 : f32 to vector<1x256xf32>
    %10 = arith.subf %9, %2 : vector<1x256xf32>
    %cst_9 = arith.constant 5.000000e-01 : f32
    %11 = vector.broadcast %cst_9 : f32 to vector<1x256xf32>
    %12 = arith.mulf %11, %2 : vector<1x256xf32>
    %cst_10 = arith.constant 3.14159274 : f32
    %13 = vector.broadcast %cst_10 : f32 to vector<1x256xf32>
    %14 = arith.mulf %2, %13 : vector<1x256xf32>
    %15 = math.sin %14 : vector<1x256xf32>
    %16 = vector.extract_strided_slice %8 {offsets = [0, 0], sizes = [32, 256], strides = [1, 1]} : vector<128x256xf32> to vector<32x256xf32>
    %17 = vector.broadcast %2 : vector<1x256xf32> to vector<32x256xf32>
    %18 = arith.mulf %17, %16 : vector<32x256xf32>
    %19 = vector.extract_strided_slice %8 {offsets = [32, 0], sizes = [32, 256], strides = [1, 1]} : vector<128x256xf32> to vector<32x256xf32>
    %20 = vector.broadcast %10 : vector<1x256xf32> to vector<32x256xf32>
    %21 = arith.mulf %20, %19 : vector<32x256xf32>
    %22 = arith.addf %18, %21 : vector<32x256xf32>
    %23 = vector.extract_strided_slice %8 {offsets = [64, 0], sizes = [32, 256], strides = [1, 1]} : vector<128x256xf32> to vector<32x256xf32>
    %24 = vector.broadcast %12 : vector<1x256xf32> to vector<32x256xf32>
    %25 = arith.mulf %24, %23 : vector<32x256xf32>
    %26 = arith.addf %22, %25 : vector<32x256xf32>
    %27 = vector.extract_strided_slice %8 {offsets = [96, 0], sizes = [32, 256], strides = [1, 1]} : vector<128x256xf32> to vector<32x256xf32>
    %28 = vector.broadcast %15 : vector<1x256xf32> to vector<32x256xf32>
    %29 = arith.mulf %28, %27 : vector<32x256xf32>
    %30 = arith.addf %26, %29 : vector<32x256xf32>
    %c0_11 = arith.constant 0 : index
    %c0_12 = arith.constant 0 : index
    %31 = vector.load %arg6[%c0_11, %c0_12] : memref<32x1xf32, #tpu.memory_space<vmem>>, vector<32x1xf32>
    %32 = vector.broadcast %31 : vector<32x1xf32> to vector<32x256xf32>
    %33 = arith.addf %30, %32 : vector<32x256xf32>
    %cst_13 = arith.constant dense<0.000000e+00> : vector<256xf32>
    %34 = vector.multi_reduction <add>, %33, %cst_13 [0] : vector<32x256xf32> to vector<256xf32>
    %35 = vector.shape_cast %34 : vector<256xf32> to vector<1x256xf32>
    %cst_14 = arith.constant 3.125000e-02 : f32
    %36 = vector.broadcast %cst_14 : f32 to vector<1x256xf32>
    %37 = arith.mulf %35, %36 : vector<1x256xf32>
    %38 = arith.mulf %33, %33 : vector<32x256xf32>
    %cst_15 = arith.constant dense<0.000000e+00> : vector<256xf32>
    %39 = vector.multi_reduction <add>, %38, %cst_15 [0] : vector<32x256xf32> to vector<256xf32>
    %40 = vector.shape_cast %39 : vector<256xf32> to vector<1x256xf32>
    %cst_16 = arith.constant 3.125000e-02 : f32
    %41 = vector.broadcast %cst_16 : f32 to vector<1x256xf32>
    %42 = arith.mulf %40, %41 : vector<1x256xf32>
    %43 = arith.mulf %37, %37 : vector<1x256xf32>
    %44 = arith.subf %42, %43 : vector<1x256xf32>
    %cst_17 = arith.constant 9.99999974E-6 : f32
    %45 = vector.broadcast %cst_17 : f32 to vector<1x256xf32>
    %46 = arith.addf %44, %45 : vector<1x256xf32>
    %47 = math.rsqrt %46 : vector<1x256xf32>
    %c0_18 = arith.constant 0 : index
    %c0_19 = arith.constant 0 : index
    %48 = vector.load %arg7[%c0_18, %c0_19] : memref<32x1xf32, #tpu.memory_space<vmem>>, vector<32x1xf32>
    %49 = vector.broadcast %47 : vector<1x256xf32> to vector<32x256xf32>
    %50 = vector.broadcast %48 : vector<32x1xf32> to vector<32x256xf32>
    %51 = arith.mulf %49, %50 : vector<32x256xf32>
    %52 = vector.broadcast %37 : vector<1x256xf32> to vector<32x256xf32>
    %53 = arith.subf %33, %52 : vector<32x256xf32>
    %54 = arith.mulf %53, %51 : vector<32x256xf32>
    %c0_20 = arith.constant 0 : index
    %c0_21 = arith.constant 0 : index
    %55 = vector.load %arg8[%c0_20, %c0_21] : memref<32x1xf32, #tpu.memory_space<vmem>>, vector<32x1xf32>
    %56 = vector.broadcast %55 : vector<32x1xf32> to vector<32x256xf32>
    %57 = arith.addf %54, %56 : vector<32x256xf32>
    %58 = arith.addf %57, %1 : vector<32x256xf32>
    %c0_22 = arith.constant 0 : index
    %c0_23 = arith.constant 0 : index
    %c0_24 = arith.constant 0 : index
    %59 = vector.load %arg9[%c0_22, %c0_23, %c0_24] : memref<1x32x256xf32, #tpu.memory_space<vmem>>, vector<1x32x256xf32>
    %60 = vector.shape_cast %59 : vector<1x32x256xf32> to vector<32x256xf32>
    %61 = vector.shape_cast %58 : vector<32x256xf32> to vector<1x32x256xf32>
    tpu.vector_store %arg9[%c0_22, %c0_23, %c0_24], %61 {strides = array<i32>} : memref<1x32x256xf32, #tpu.memory_space<vmem>>, vector<1x32x256xf32>,
    return
  }
  func.func @transform_0(%arg0: i32, %arg1: i32) -> (i32, i32, i32) {
    %c0_i32 = arith.constant 0 : i32
    %c0_i32_0 = arith.constant 0 : i32
    return %arg0, %c0_i32, %arg1 : i32, i32, i32
  }
  func.func @transform_1(%arg0: i32, %arg1: i32) -> (i32, i32) {
    %c0_i32 = arith.constant 0 : i32
    %c0_i32_0 = arith.constant 0 : i32
    return %c0_i32, %arg1 : i32, i32
  }
  func.func @transform_2(%arg0: i32, %arg1: i32) -> (i32, i32) {
    %c0_i32 = arith.constant 0 : i32
    %c0_i32_0 = arith.constant 0 : i32
    %c0_i32_1 = arith.constant 0 : i32
    return %c0_i32, %c0_i32_0 : i32, i32
  }
  func.func @transform_3(%arg0: i32, %arg1: i32) -> (i32, i32) {
    %c0_i32 = arith.constant 0 : i32
    %c0_i32_0 = arith.constant 0 : i32
    %c0_i32_1 = arith.constant 0 : i32
    return %c0_i32, %c0_i32_0 : i32, i32
  }
  func.func @transform_4(%arg0: i32, %arg1: i32) -> (i32, i32) {
    %c0_i32 = arith.constant 0 : i32
    %c0_i32_0 = arith.constant 0 : i32
    %c0_i32_1 = arith.constant 0 : i32
    return %c0_i32, %c0_i32_0 : i32, i32
  }
  func.func @transform_5(%arg0: i32, %arg1: i32) -> (i32, i32) {
    %c0_i32 = arith.constant 0 : i32
    %c0_i32_0 = arith.constant 0 : i32
    %c0_i32_1 = arith.constant 0 : i32
    return %c0_i32, %c0_i32_0 : i32, i32
  }
  func.func @transform_6(%arg0: i32, %arg1: i32) -> (i32, i32) {
    %c0_i32 = arith.constant 0 : i32
    %c0_i32_0 = arith.constant 0 : i32
    %c0_i32_1 = arith.constant 0 : i32
    return %c0_i32, %c0_i32_0 : i32, i32
  }
  func.func @transform_7(%arg0: i32, %arg1: i32) -> (i32, i32, i32) {
    %c0_i32 = arith.constant 0 : i32
    %c0_i32_0 = arith.constant 0 : i32
    return %arg0, %c0_i32, %arg1 : i32, i32, i32
  }
}

</mosaic_0001>

<bundles_post_ra>
// kernel: tpu_custom_call.1
= control target key start
LH: loop header
LB: loop body
LE: loop exit
PB: predicated region body
PF: predicated region fallthrough
CT: control target
= control target key end

     0   :  { %12 = vsyncpa [#allocation3], 0  ;;  %s1943_s0 = inlined_call_operand.vmem [shape: f32[2,32,256], index: 0, kind: input, shape index: {}]   ;;  %s1944_s1 = inlined_call_operand.vmem [shape: f32[1,256], index: 1, kind: input, shape index: {}]   ;;  %s1945_s2 = inlined_call_operand.vmem [shape: bf16[128,32], index: 2, kind: input, shape index: {}]   ;;  %s1946_s3 = inlined_call_operand.vmem [shape: f32[128,1], index: 3, kind: input, shape index: {}]   ;;  %s1947_s4 = inlined_call_operand.vmem [shape: f32[32,1], index: 4, kind: input, shape index: {}]   ;;  %s1948_s5 = inlined_call_operand.vmem [shape: f32[32,1], index: 5, kind: input, shape index: {}]   ;;  %s1949_s6 = inlined_call_operand.vmem [shape: f32[32,1], index: 6, kind: input, shape index: {}]   ;;  %s1950_s7 = inlined_call_operand.hbm [shape: f32[2,32,256], index: 7, kind: output, shape index: {}]  }
   0x1   :  { %14 = vsyncpa [#allocation3 + $0x1], 0  ;;  %s1448_s24 = smov 0   ;;  %s1450_s25 = smov 0  }
   0x2   :  { %s1452_s26 = smov 0   ;;  %s1454_s27 = smov 0  }
   0x3   :  { %s1456_s28 = smov 0   ;;  %s1458_s29 = smov 0  }
   0x4 LB: > { %s1161_s30 = sadd.s32 4294967295, %s1397_s29   ;;  %s1162_s8 = sadd.s32 4294967294, %s1397_s29   ;;  %s1397_s29 = sphi %s1458_s29, %s20_s29   ;;  %s1393_s28 = sphi %s1456_s28, %s1959_s28   ;;  %s1389_s27 = sphi %s1454_s27, %s1958_s27   ;;  %s1385_s26 = sphi %s1452_s26, %s1957_s26   ;;  %s1381_s25 = sphi %s1450_s25, %s1956_s25   ;;  %s1377_s24 = sphi %s1448_s24, %s1955_s24  }
   0x5   : > { %s32_s9 = sadd.s32 1, %s1393_s28  ;;  %s200_s10 = sadd.s32 1, %s1385_s26 }
   0x6   : > { %p34_p0 = scmp.ge.s32.totalorder %s32_s9, 2  ;;  %p210_p1 = scmp.ne.s32.totalorder %s1385_s26, %s1381_s25 }
   0x7   : > { %p211_p2 = scmp.eq.s32.totalorder %s1161_s30, 1  ;;  %p216_p3 = scmp.ne.s32.totalorder %s1381_s25, %s1377_s24 }
   0x8   : > { %s1961_s9 = smov (%p34_p0, %s32_s9), 0  ;;  %p217_p5 = scmp.eq.s32.totalorder %s1162_s8, 1 }
   0x9   : > { %p1488_p4 = por %p211_p2, %p210_p1  ;;  %s195_s12 = ssub.s32 %s1393_s28, %s1961_s9 }
   0xa   : > { %p1166_p6 = scmp.ge.s32.totalorder %s1397_s29, 1  ;;  %p198_p7 = scmp.eq.s32.totalorder %s195_s12, 0 }
   0xb   : > { %p1495_p8 = por %p217_p5, %p216_p3  ;;  %p271_p9 = scmp.lt.s32.totalorder %s1397_s29, 3 }
   0xc   : > { %s1501_s14 = scalar_select %p198_p7, %s1385_s26, %s200_s10  }
   0xd   : > { %p272_p10 = pnand %p1166_p6, %p271_p9 }
   0xe   : > { %p312_p11 = scmp.lt.s32.totalorder (!%p272_p10), %s1389_s27, 1  ;;  %s1235_s23 = sshll.u32 (!%p272_p10), %s1389_s27, 6 }
   0xf   : > { %275 = sbr.rel (%p272_p10) target bundleno = 289 (0x121), region = 48  ;;  %s1066_s10 = scalar_lea.hbm (!%p272_p10), %s1950_s7, %s1235_s23 }
  0x10   : > { %s1069_s16 = sshll.u32 (!%p272_p10), %s1066_s10, 4  ;;  %s1070_s16 = int_to_ptr.hbm [resolvable:$true] %s1069_s16 }
  0x11   : > { %s1333_s18 = sshra.s32 (!%p272_p10), %s1070_s16, 4  ;;  %s1334_s18 = int_to_ptr.hbm [resolvable:$true] %s1333_s18 }
  0x12   : > { %s1335_s19 = scalar_lea.hbm (!%p272_p10), %s1334_s18, 64  ;;  %p1340_p1 = scmp.lt.s32.totalorder (!%p272_p10), %s1334_s18, %s1950_s7 }
  0x13   : > { %p1336_p12 = scmp.ne.s32.totalorder (!%p272_p10), %s1334_s18, %s1335_s19 }
  0x14   : > { %v359_v0 = vld [vmem:[%s1946_s3 + $0x10] sm:$0xff]  ;;  %v357_v1 = vld [vmem:[%s1946_s3] sm:$0xff]  ;;  %v1399_v2 = vmov 0   ;;  %s313_s21 = scalar_select %p312_p11, %s1389_s27, 1  ;;  %v360_v7 = vld [vmem:[%s1946_s3 + $0x18] sm:$0xff]  ;;  %vm493_vm0 = vcmask 261120  }
  0x15   : > { %1305 = vset.pattern.permute.xlu1 %v1399_v2  ;;  %1304 = vset.pattern.permute.xlu0 %v1399_v2  ;;  %v361_v3 = vld [vmem:[%s1946_s3 + $0x20] sm:$0xff]  ;;  %v358_v13 = vld [vmem:[%s1946_s3 + $0x8] sm:$0xff]  ;;  %v364_v21 = vld [vmem:[%s1946_s3 + $0x38] sm:$0xff]  ;;  %v1400_v58 = vmov 2102212464   ;;  %p1337_p13 = pnand %p1336_p12, %p1488_p4 }
  0x16   : > { %385 = vperm.xlu1 %1305, %v359_v0   ;;  %375 = vperm.xlu0 %1304, %v357_v1   ;;  %s1226_s22 = sshll.u32 %s313_s21, 6  ;;  %v362_v17 = vld [vmem:[%s1946_s3 + $0x28] sm:$0xff]  ;;  %v1227_v19 = vld [vmem:[%s1945_s2] sm:$0xff]  ;;  %v363_v22 = vld [vmem:[%s1946_s3 + $0x30] sm:$0xff]  ;;  %v1401_v62 = vmov 683565275  }
  0x17   : > { %1306 = vset.pattern.permute.xlu2 %v1399_v2  ;;  %s1520_s8 = scalar_lea.vmem %s1943_s0, %s1226_s22  ;;  %v1231_v20 = vld [vmem:[%s1945_s2 + $0x20] sm:$0xff]  ;;  %v367_v24 = vld [vmem:[%s1946_s3 + $0x50] sm:$0xff]  ;;  %v366_v25 = vld [vmem:[%s1946_s3 + $0x48] sm:$0xff]  ;;  %v1402_v0 = vmov 2475754826   ;;  %s308_s21 = sand.u32 1, %s1381_s25  }
  0x18   : > { %395 = vperm.xlu2 %1306, %v361_v3   ;;  %v332_v4 = vld [vmem:[%s1520_s8 + $0x20] sm:$0xff]  ;;  %v334_v5 = vld [vmem:[%s1520_s8 + $0x30] sm:$0xff]  ;;  %v333_v6 = vld [vmem:[%s1520_s8 + $0x28] sm:$0xff]  ;;  %s1894_s22 = sshll.u32 %s308_s21, 6  ;;  %s1053_s17 = scalar_lea.sflag [#allocation3], %s308_s21 }
  0x19   : > { %v355_v8 = vpack.c.bf16 %v334_v5, %v332_v4  ;;  %v335_v9 = vld [vmem:[%s1520_s8 + $0x38] sm:$0xff]  ;;  %v328_v10 = vld [vmem:[%s1520_s8] sm:$0xff]  ;;  %v330_v11 = vld [vmem:[%s1520_s8 + $0x10] sm:$0xff]  ;;  %v1403_v4 = vmov 2131351028   ;;  %s310_s12 = scalar_lea.vmem [#allocation2], %s1894_s22  ;;  %p1338_p0 = pneg %p1337_p13 }
  0x1a   : > { %v356_v12 = vpack.c.bf16 %v335_v9, %v333_v6  ;;  %v329_v14 = vld [vmem:[%s1520_s8 + $0x8] sm:$0xff]  ;;  %v331_v15 = vld [vmem:[%s1520_s8 + $0x18] sm:$0xff]  ;;  %v353_v16 = vpack.c.bf16 %v330_v11, %v328_v10  ;;  %v365_v23 = vld [vmem:[%s1946_s3 + $0x40] sm:$0xff]  ;;  %v1404_v10 = vmov 920167782   ;;  %s1067_s15 = sshll.u32 %s310_s12, 4  ;;  %s1068_s15 = int_to_ptr.vmem [resolvable:$true] %s1067_s15 }
  0x1b   : > { %524 = vmatpush.bf16.msra.mxu0 %v355_v8  ;;  %1236 = vmatpush.bf16.msra.mxu2 %v355_v8  ;;  %v354_v18 = vpack.c.bf16 %v331_v15, %v329_v14  ;;  %v368_v26 = vld [vmem:[%s1946_s3 + $0x58] sm:$0xff]  ;;  %v1228_v27 = vld [vmem:[%s1945_s2 + $0x8] sm:$0xff]  ;;  %v369_v30 = vld [vmem:[%s1946_s3 + $0x60] sm:$0xff] }
  0x1c   : > { %573 = vmatpush.bf16.msra.mxu1 %v356_v12  ;;  %1238 = vmatpush.bf16.msra.mxu3 %v356_v12  ;;  %v1232_v28 = vld [vmem:[%s1945_s2 + $0x28] sm:$0xff]  ;;  %v371_v31 = vld [vmem:[%s1946_s3 + $0x70] sm:$0xff]  ;;  %v850_v32 = vld [vmem:[%s1947_s4] sm:$0xff] }
  0x1d   : > { %v370_v29 = vld [vmem:[%s1946_s3 + $0x68] sm:$0xff]  ;;  %v372_v33 = vld [vmem:[%s1946_s3 + $0x78] sm:$0xff]  ;;  %v1229_v35 = vld [vmem:[%s1945_s2 + $0x10] sm:$0xff] }
  0x1e   : > { %390 = vperm.xlu1 %1305, %v360_v7   ;;  %380 = vperm.xlu0 %1304, %v358_v13   ;;  %v851_v34 = vld [vmem:[%s1947_s4 + $0x8] sm:$0xff]  ;;  %v1233_v36 = vld [vmem:[%s1945_s2 + $0x30] sm:$0xff]  ;;  %v853_v37 = vld [vmem:[%s1947_s4 + $0x18] sm:$0xff] }
  0x1f   : > { %525 = vmatpush.bf16.msra.mxu0 %v353_v16  ;;  %1237 = vmatpush.bf16.msra.mxu2 %v353_v16  ;;  %v852_v38 = vld [vmem:[%s1947_s4 + $0x10] sm:$0xff]  ;;  %v956_v39 = vld [vmem:[%s1948_s5] sm:$0xff]  ;;  %v957_v45 = vld [vmem:[%s1948_s5 + $0x8] sm:$0xff] }
  0x20   : > { %400 = vperm.xlu2 %1306, %v362_v17   ;;  %574 = vmatpush.bf16.msra.mxu1 %v354_v18  ;;  %v1617_v40 = vld [vmem:[%s1944_s1] sm:$0x3]  ;;  %v958_v44 = vld [vmem:[%s1948_s5 + $0x10] sm:$0xff]  ;;  %v959_v46 = vld [vmem:[%s1948_s5 + $0x18] sm:$0xff]  ;;  %v1405_v17 = vmov 1326507024  }
  0x21   : > { %1239 = vmatpush.bf16.msra.mxu3 %v354_v18  ;;  %v1620_v41 = vmul.f32 3.1415927, %v1617_v40  ;;  %v1230_v49 = vld [vmem:[%s1945_s2 + $0x18] sm:$0xff]  ;;  %v1005_v53 = vld [vmem:[%s1949_s6 + $0x8] sm:$0xff]  ;;  %v1004_v54 = vld [vmem:[%s1949_s6] sm:$0xff] }
  0x22   : > { %1202 = vmatmul.msk.bf16.vlgmr.msra.gmra.mxu0 %vm493_vm0, %v1227_v19  ;;  %1206 = vmatmul.msk.bf16.vlgmr.msra.gmra.mxu2 %vm493_vm0, %v1231_v20  ;;  %v1234_v50 = vld [vmem:[%s1945_s2 + $0x38] sm:$0xff]  ;;  %v1006_v55 = vld [vmem:[%s1949_s6 + $0x10] sm:$0xff] }
  0x23   : > { %1210 = vmatmul.msk.bf16.vlgmr.msra.gmra.mxu1 %vm493_vm0, %v1227_v19  ;;  %v622_v42 = vand.u32 2139095040, %v1620_v41  ;;  %v619_v57 = vand.u32 2147483647, %v1620_v41  ;;  %v1007_v15 = vld [vmem:[%s1949_s6 + $0x18] sm:$0xff]  ;;  %vm621_vm13 = vcmp.lt.s32.totalorder %v1620_v41, 0 }
  0x24   : > { %1214 = vmatmul.msk.bf16.vlgmr.msra.gmra.mxu3 %vm493_vm0, %v1231_v20 }
  0x25   : > { %v623_v43 = vshrl.u32 %v622_v42, 23  ;;  %v626_v60 = vand.u32 8388607, %v619_v57  ;;  %vm1702_vm14 = vcmp.le.f32.partialorder %v619_v57, 0.7853982 }
  0x26   : > { %410 = vperm.xlu1 %1305, %v364_v21   ;;  %405 = vperm.xlu0 %1304, %v363_v22  }
  0x27   : > { %v1218_v47 = vadd.s32 4294967169, %v623_v43  ;;  %v627_v8 = vor.u32 8388608, %v626_v60 }
  0x28   : > { %415 = vperm.xlu2 %1306, %v365_v23  }
  0x29   : > { %v629_v48 = vadd.s32 1, %v1218_v47  ;;  %v667_v20 = vshll.u32 %v627_v8, 8 }
  0x2b   : > { %vm630_vm1 = vcmp.gt.s32.totalorder %v629_v48, 0 }
  0x2c   : > { %v631_v51 = vsel %vm630_vm1, %v629_v48, 0 }
  0x2d   : > { %v633_v52 = vand.u32 31, %v631_v51  ;;  %v1656_v61 = vshrl.u32 %v631_v51, 5 }
  0x2e   : > { %425 = vperm.xlu1 %1305, %v367_v24   ;;  %420 = vperm.xlu0 %1304, %v366_v25   ;;  %v668_v25 = vand.u32 65535, %v667_v20 }
  0x2f   : > { %v1651_v56 = vsub.s32 32, %v633_v52  ;;  %v645_v59 = vshll.u32 %v1400_v58, %v633_v52  ;;  %v636_v63 = vshll.u32 %v1401_v62, %v633_v52  ;;  %v639_v3 = vshll.u32 %v1402_v0, %v633_v52 }
  0x30   : > { %430 = vperm.xlu2 %1306, %v368_v26   ;;  %v642_v6 = vshll.u32 %v1403_v4, %v633_v52  ;;  %v648_v12 = vshll.u32 %v1404_v10, %v633_v52  ;;  %vm651_vm2 = vcmp.lt.s32.totalorder %v1656_v61, 1  ;;  %vm653_vm3 = vcmp.lt.s32.totalorder %v1656_v61, 3 }
  0x31   : > { %v637_v1 = vshrl.u32 %v1402_v0, %v1651_v56  ;;  %v640_v5 = vshrl.u32 %v1403_v4, %v1651_v56  ;;  %v643_v7 = vshrl.u32 %v1400_v58, %v1651_v56  ;;  %v646_v11 = vshrl.u32 %v1404_v10, %v1651_v56 }
  0x32   : > { %1203 = vmatmul.msk.bf16.gmra.mxu0 %vm493_vm0, %v1228_v27  ;;  %1207 = vmatmul.msk.bf16.gmra.mxu2 %vm493_vm0, %v1232_v28  ;;  %v649_v18 = vshrl.u32 %v1405_v17, %v1651_v56  ;;  %vm652_vm4 = vcmp.lt.s32.totalorder %v1656_v61, 2  ;;  %vm654_vm5 = vcmp.lt.s32.totalorder %v1656_v61, 4 }
  0x33   : > { %1211 = vmatmul.msk.bf16.gmra.mxu1 %vm493_vm0, %v1228_v27  ;;  %v638_v9 = vor.u32 %v637_v1, %v636_v63  ;;  %v641_v13 = vor.u32 %v640_v5, %v639_v3  ;;  %v644_v14 = vor.u32 %v643_v7, %v642_v6  ;;  %v647_v16 = vor.u32 %v646_v11, %v645_v59 }
  0x34   : > { %1215 = vmatmul.msk.bf16.gmra.mxu3 %vm493_vm0, %v1232_v28  ;;  %v650_v21 = vor.u32 %v649_v18, %v648_v12  ;;  %v669_v28 = vshrl.u32 %v667_v20, 16 }
  0x35   : > { %v659_v19 = vsel %vm651_vm2, %v638_v9, %v641_v13  ;;  %v660_v22 = vsel %vm654_vm5, %v647_v16, 920167782  ;;  %v663_v24 = vsel %vm651_vm2, %v641_v13, %v644_v14  ;;  %v656_v59 = vsel %vm654_vm5, %v644_v14, 2102212464 }
  0x36   : > { %440 = vperm.xlu1 %1305, %v370_v29   ;;  %435 = vperm.xlu0 %1304, %v369_v30   ;;  %v661_v23 = vsel %vm653_vm3, %v644_v14, %v660_v22  ;;  %v664_v27 = vsel %vm654_vm5, %v650_v21, 1326507024  ;;  %v657_v3 = vsel %vm653_vm3, %v641_v13, %v656_v59 }
  0x37   : > { %v662_v26 = vsel %vm652_vm4, %v659_v19, %v661_v23  ;;  %v665_v29 = vsel %vm653_vm3, %v647_v16, %v664_v27 }
  0x38   : > { %445 = vperm.xlu2 %1306, %v371_v31   ;;  %v692_v30 = vand.u32 65535, %v662_v26  ;;  %v693_v31 = vshrl.u32 %v662_v26, 16 }
  0x3a   : > { %v697_v43 = vmul.u32 %v693_v31, %v669_v28 }
  0x3e   : > { %856 = vperm.xlu1 %1305, %v850_v32   ;;  %450 = vperm.xlu0 %1304, %v372_v33   ;;  %v666_v32 = vsel %vm652_vm4, %v663_v24, %v665_v29 }
  0x3f   : > { %v670_v33 = vand.u32 65535, %v666_v32 }
  0x40   : > { %861 = vperm.xlu2 %1306, %v851_v34   ;;  %v671_v34 = vshrl.u32 %v666_v32, 16 }
  0x41   : > { %v674_v42 = vmul.u32 %v670_v33, %v669_v28 }
  0x42   : > { %1204 = vmatmul.msk.bf16.gmra.mxu0 %vm493_vm0, %v1229_v35  ;;  %1208 = vmatmul.msk.bf16.gmra.mxu2 %vm493_vm0, %v1233_v36 }
  0x43   : > { %1212 = vmatmul.msk.bf16.gmra.mxu1 %vm493_vm0, %v1229_v35  ;;  %v695_v35 = vmul.u32 %v693_v31, %v668_v25  ;;  %v678_v48 = vshll.u32 %v674_v42, 16  ;;  %v679_v4 = vshrl.u32 %v674_v42, 16 }
  0x44   : > { %1216 = vmatmul.msk.bf16.gmra.mxu3 %vm493_vm0, %v1233_v36  ;;  %v694_v36 = vmul.u32 %v692_v30, %v668_v25 }
  0x45   : > { %v699_v63 = vshrl.u32 %v695_v35, 16 }
  0x46   : > { %871 = vperm.xlu1 %1305, %v853_v37   ;;  %866 = vperm.xlu0 %1304, %v852_v38   ;;  %v696_v37 = vmul.u32 %v692_v30, %v669_v28  ;;  %v672_v38 = vmul.u32 %v670_v33, %v668_v25 }
  0x48   : > { %962 = vperm.xlu2 %1306, %v956_v39   ;;  %v673_v39 = vmul.u32 %v671_v34, %v668_v25 }
  0x4a   : > { %v676_v47 = vshll.u32 %v673_v39, 16 }
  0x4c   : > { %vm680_vm7 = vc.u32 %v672_v38, %v676_v47 }
  0x4d   : > { %v681_v52 = vsel %vm680_vm7, 1, %v1399_v2 }
  0x4e   : > { %972 = vperm.xlu1 %1305, %v958_v44   ;;  %967 = vperm.xlu0 %1304, %v957_v45   ;;  %v698_v44 = vshll.u32 %v695_v35, 16  ;;  %v700_v45 = vshll.u32 %v696_v37, 16 }
  0x50   : > { %977 = vperm.xlu2 %1306, %v959_v46   ;;  %v675_v46 = vmul.u32 %v671_v34, %v669_v28  ;;  %vm702_vm6 = vc.u32 %v694_v36, %v698_v44 }
  0x51   : > { %v703_v51 = vsel %vm702_vm6, 1, %v1399_v2 }
  0x52   : > { %1205 = vmatmul.msk.bf16.gmra.mxu0 %vm493_vm0, %v1230_v49  ;;  %1209 = vmatmul.msk.bf16.gmra.mxu2 %vm493_vm0, %v1234_v50  ;;  %v683_v58 = vadd.s32 %v681_v52, %v675_v46 }
  0x53   : > { %1213 = vmatmul.msk.bf16.gmra.mxu1 %vm493_vm0, %v1230_v49  ;;  %v704_v49 = vadd.s32 %v698_v44, %v694_v36 }
  0x54   : > { %1217 = vmatmul.msk.bf16.gmra.mxu3 %vm493_vm0, %v1234_v50  ;;  %v682_v50 = vadd.s32 %v676_v47, %v672_v38 }
  0x55   : > { %vm706_vm8 = vc.u32 %v704_v49, %v700_v45  ;;  %v708_v7 = vadd.s32 %v704_v49, %v700_v45 }
  0x56   : > { %1015 = vperm.xlu1 %1305, %v1005_v53   ;;  %1010 = vperm.xlu0 %1304, %v1004_v54   ;;  %v705_v53 = vadd.s32 %v703_v51, %v697_v43  ;;  %v635_v54 = vshrl.u32 %v1401_v62, %v1651_v56  ;;  %vm684_vm9 = vc.u32 %v682_v50, %v678_v48  ;;  %v707_v0 = vsel %vm706_vm8, 1, %v1399_v2 }
  0x57   : > { %v685_v60 = vsel %vm684_vm9, 1, %v1399_v2  ;;  %v701_v56 = vshrl.u32 %v696_v37, 16 }
  0x58   : > { %1020 = vperm.xlu2 %1306, %v1006_v55   ;;  %v677_v55 = vshrl.u32 %v673_v39, 16  ;;  %v655_v1 = vsel %vm651_vm2, %v635_v54, %v638_v9  ;;  %v687_v5 = vadd.s32 %v685_v60, %v683_v58  ;;  %v709_v62 = vadd.s32 %v707_v0, %v705_v53 }
  0x59   : > { %v658_v8 = vsel %vm652_vm4, %v655_v1, %v657_v3  ;;  %vm762_vm2 = vweird.f32 %v1620_v41 }
  0x5a   : > { %v688_v6 = vadd.s32 %v687_v5, %v677_v55  ;;  %v710_v10 = vadd.s32 %v709_v62, %v699_v63  ;;  %v712_v14 = vmul.u32 %v667_v20, %v658_v8 }
  0x5c   : > { %v689_v11 = vadd.s32 %v688_v6, %v679_v4  ;;  %v711_v12 = vadd.s32 %v710_v10, %v701_v56 }
  0x5e   : > { %1025 = vperm.xlu0 %1304, %v1007_v15   ;;  %vm714_vm10 = vc.u32 %v689_v11, %v708_v7  ;;  %v715_v2 = vadd.s32 1, %v711_v12  ;;  %v713_v24 = vadd.s32 %v708_v7, %v689_v11 }
  0x60   : > { %v716_v15 = vsel %vm714_vm10, %v715_v2, %v711_v12 }
  0x61   : > { %v717_v9 = vadd.s32 %v716_v15, %v712_v14 }
  0x63   : > { %v718_v16 = vadd.s32 536870912, %v717_v9 }
  0x65   : > { %v719_v17 = vshrl.u32 %v718_v16, 30 }
  0x67   : > { %v720_v13 = vshll.u32 %v719_v17, 30  ;;  %v743_v60 = vsub.s32 4, %v719_v17 }
  0x69   : > { %v721_v18 = vsub.s32 %v717_v9, %v720_v13  ;;  %v744_v5 = vsel %vm621_vm13, %v743_v60, %v719_v17 }
  0x6a   : > { %v746_v10 = vsel %vm1702_vm14, 0, %v744_v5 }
  0x6b   : > { %vm722_vm11 = vcmp.lt.s32.totalorder %v721_v18, 0  ;;  %v723_v19 = vsub.s32 0, %v721_v18  ;;  %v763_v9 = vadd.s32 3, %v746_v10 }
  0x6d   : > { %v724_v21 = vsel %vm722_vm11, %v723_v19, %v721_v18 }
  0x6e   : > { %v725_v22 = vclz %v724_v21 }
  0x70   : > { %v1219_v23 = vadd.s32 4294967294, %v725_v22 }
  0x72   : > { %vm1220_vm12 = vcmp.lt.s32.totalorder %v1219_v23, 0  ;;  %v1725_v52 = vpop.permute.xlu2 %395 }
  0x73   : > { %v728_v61 = vsel %vm1220_vm12, 0, %v1219_v23 }
  0x74   : > { %v729_v25 = vsub.s32 32, %v728_v61  ;;  %v730_v26 = vshll.u32 %v721_v18, %v728_v61  ;;  %v733_v27 = vsub.s32 4294967266, %v728_v61  ;;  %v764_v18 = vand.u32 3, %v763_v9 }
  0x76   : > { %v731_v20 = vshrl.u32 %v713_v24, %v729_v25  ;;  %v734_v28 = vadd.s32 127, %v733_v27  ;;  %vm766_vm15 = vcmp.eq.s32.totalorder %v764_v18, 0  ;;  %vm769_vm0 = vcmp.eq.s32.totalorder %v764_v18, 2 }
  0x77   : > { %v617_v27 = vmul.f32 0.5, %v1617_v40  ;;  %vm765_vm1 = vcmp.lt.s32.totalorder %v764_v18, 2 }
  0x78   : > { %v732_v29 = vor.u32 %v731_v20, %v730_v26  ;;  %v735_v30 = vshll.u32 %v734_v28, 23 }
  0x7a   : > { %v736_v31 = vor.u32 4788187, %v735_v30  ;;  %v739_v32 = vcvt.s32.f32 %v732_v29  ;;  %v401_v56 = vpop.permute.xlu2 %400  ;;  %v616_v29 = vsub.f32 1.0, %v1617_v40 }
  0x7c   : > { %v737_v33 = vand.u32 2147483647, %v736_v31 }
  0x7e   : > { %v740_v34 = vmul.f32 %v739_v32, %v737_v33  ;;  %v1754_v32 = vperm.slane %v1617_v40, 0 }
  0x80   : > { %v741_v35 = vxor.u32 2147483648, %v740_v34 }
  0x82   : > { %v742_v37 = vsel %vm621_vm13, %v741_v35, %v740_v34  ;;  %v416_v19 = vpop.permute.xlu2 %415 }
  0x83   : > { %v745_v38 = vsel %vm1702_vm14, %v1620_v41, %v742_v37  ;;  %v1761_v37 = vperm.slane %v1617_v40, 1 }
  0x84   : > { %v747_v39 = vmul.f32 %v745_v38, %v745_v38 }
  0x86   : > { %v755_v45 = vmul.f32 -0.00019511016, %v747_v39  ;;  %v748_v48 = vmul.f32 -0.001358992, %v747_v39 }
  0x88   : > { %v1713_v44 = vpop.permute.xlu0 %375  ;;  %v1719_v47 = vpop.permute.xlu1 %385  ;;  %v756_v49 = vadd.f32 0.008332121, %v755_v45  ;;  %v749_v54 = vadd.f32 0.041655596, %v748_v48 }
  0x8a   : > { %v757_v55 = vmul.f32 %v756_v49, %v747_v39  ;;  %v750_v63 = vmul.f32 %v749_v54, %v747_v39  ;;  %v1757_v35 = vpop.permute.xlu2 %430  ;;  %v1771_v54 = vperm.slane %v616_v29, 0 }
  0x8c   : > { %v758_v0 = vadd.f32 -0.16666654, %v757_v55  ;;  %v751_v62 = vadd.f32 -0.4999988, %v750_v63 }
  0x8e   : > { %v759_v6 = vmul.f32 %v758_v0, %v747_v39  ;;  %v752_v12 = vmul.f32 %v751_v62, %v747_v39  ;;  %v1765_v39 = vperm.slane %v617_v27, 1  ;;  %v1775_v0 = vperm.slane %v616_v29, 1 }
  0x90   : > { %v381_v53 = vpop.permute.xlu0 %380  ;;  %v1729_v4 = vpop.permute.xlu1 %390  ;;  %v760_v14 = vadd.f32 1.0, %v759_v6  ;;  %v753_v17 = vadd.f32 1.0, %v752_v12 }
  0x92   : > { %v761_v13 = vmul.f32 %v760_v14, %v745_v38  ;;  %v770_v61 = vxor.u32 2147483648, %v753_v17  ;;  %v1763_v38 = vperm.slane %v617_v27, 0  ;;  %v446_v29 = vpop.permute.xlu2 %445 }
  0x94   : > { %v767_v24 = vxor.u32 2147483648, %v761_v13  ;;  %v771_v28 = vsel %vm769_vm0, %v770_v61, %v761_v13 }
  0x96   : > { %v768_v20 = vsel %vm766_vm15, %v753_v17, %v767_v24 }
  0x97   : > { %v772_v33 = vsel %vm765_vm1, %v768_v20, %v771_v28 }
  0x98   : > { %v1733_v7 = vpop.permute.xlu0 %405  ;;  %v1745_v16 = vpop.permute.xlu1 %410  ;;  %v773_v5 = vsel %vm762_vm2, nan, %v772_v33 }
  0x99   : > { %v1790_v14 = vperm.slane %v773_v5, 0 }
  0x9f   : > { %v527_v42 = vpop.f32.mrf.mxu0 }
  0xa0   : > { %v1711_v43 = vpop.f32.mrf.mxu1  ;;  %v421_v23 = vpop.permute.xlu0 %420  ;;  %v528_v36 = vadd.f32 %v527_v42, %v1713_v44 }
  0xa1   : > { %v426_v30 = vpop.permute.xlu1 %425  ;;  %v577_v45 = vadd.f32 %v1711_v43, %v1713_v44 }
  0xa5   : > { %v1715_v46 = vpop.f32.mrf.mxu2 }
  0xa6   : > { %v548_v48 = vadd.f32 %v1715_v46, %v416_v19 }
  0xa7   : > { %v1717_v57 = vpop.f32.mrf.mxu3  ;;  %v1721_v50 = vpop.f32.mrf.mxu0 }
  0xa8   : > { %v1723_v51 = vpop.f32.mrf.mxu1  ;;  %v597_v49 = vadd.f32 %v1717_v57, %v416_v19  ;;  %v436_v63 = vpop.permute.xlu0 %435  ;;  %v530_v42 = vadd.f32 %v1721_v50, %v381_v53  ;;  %v813_v41 = vmul.f32 %v1763_v38, %v548_v48 }
  0xa9   : > { %v579_v40 = vadd.f32 %v1723_v51, %v381_v53  ;;  %v779_v51 = vmul.f32 %v1754_v32, %v528_v36  ;;  %v780_v53 = vmul.f32 %v1761_v37, %v577_v45  ;;  %v441_v13 = vpop.permute.xlu1 %440 }
  0xaa   : > { %v781_v12 = vmul.f32 %v1754_v32, %v530_v42 }
  0xad   : > { %v549_v58 = vpop.f32.mrf.mxu2 }
  0xae   : > { %v550_v62 = vadd.f32 %v549_v58, %v421_v23  ;;  %v814_v58 = vmul.f32 %v1765_v39, %v597_v49 }
  0xaf   : > { %v1727_v59 = vpop.f32.mrf.mxu3  ;;  %v532_v1 = vpop.f32.mrf.mxu0 }
  0xb0   : > { %v581_v3 = vpop.f32.mrf.mxu1  ;;  %v599_v57 = vadd.f32 %v1727_v59, %v421_v23  ;;  %v533_v6 = vadd.f32 %v532_v1, %v1719_v47  ;;  %v1792_v59 = vperm.slane %v773_v5, 1 }
  0xb1   : > { %v582_v10 = vadd.f32 %v581_v3, %v1719_v47  ;;  %v815_v47 = vmul.f32 %v1763_v38, %v550_v62 }
  0xb2   : > { %v816_v18 = vmul.f32 %v1765_v39, %v599_v57  ;;  %v783_v19 = vmul.f32 %v1754_v32, %v533_v6 }
  0xb3   : > { %v784_v23 = vmul.f32 %v1761_v37, %v582_v10 }
  0xb5   : > { %v1735_v8 = vpop.f32.mrf.mxu2 }
  0xb6   : > { %v553_v61 = vadd.f32 %v1735_v8, %v426_v30 }
  0xb7   : > { %v1739_v11 = vpop.f32.mrf.mxu3  ;;  %v1741_v2 = vpop.f32.mrf.mxu0 }
  0xb8   : > { %v1743_v15 = vpop.f32.mrf.mxu1  ;;  %v535_v33 = vadd.f32 %v1741_v2, %v1729_v4  ;;  %v817_v2 = vmul.f32 %v1763_v38, %v553_v61 }
  0xb9   : > { %v584_v36 = vadd.f32 %v1743_v15, %v1729_v4 }
  0xbd   : > { %v1747_v21 = vpop.f32.mrf.mxu2 }
  0xbf   : > { %v1749_v22 = vpop.f32.mrf.mxu3  ;;  %v537_v25 = vpop.f32.mrf.mxu0 }
  0xc0   : > { %v586_v26 = vpop.f32.mrf.mxu1  ;;  %v538_v43 = vadd.f32 %v537_v25, %v1725_v52  ;;  %v602_v25 = vadd.f32 %v1739_v11, %v426_v30  ;;  %v451_v11 = vpop.permute.xlu0 %450 }
  0xc1   : > { %v587_v50 = vadd.f32 %v586_v26, %v1725_v52 }
  0xc2   : > { %v792_v52 = vmul.f32 %v1771_v54, %v538_v43  ;;  %v818_v62 = vmul.f32 %v1765_v39, %v602_v25 }
  0xc3   : > { %v793_v24 = vmul.f32 %v1775_v0, %v587_v50 }
  0xc4   : > { %v800_v49 = vadd.f32 %v792_v52, %v779_v51 }
  0xc5   : > { %v557_v31 = vpop.f32.mrf.mxu2  ;;  %v801_v30 = vadd.f32 %v793_v24, %v780_v53  ;;  %v862_v24 = vpop.permute.xlu2 %861 }
  0xc6   : > { %v821_v50 = vadd.f32 %v813_v41, %v800_v49  ;;  %v555_v41 = vadd.f32 %v1747_v21, %v1757_v35 }
  0xc7   : > { %v606_v34 = vpop.f32.mrf.mxu3  ;;  %v539_v55 = vpop.f32.mrf.mxu0  ;;  %v822_v51 = vadd.f32 %v814_v58, %v801_v30  ;;  %v604_v58 = vadd.f32 %v1749_v22, %v1757_v35 }
  0xc8   : > { %v588_v60 = vpop.f32.mrf.mxu1  ;;  %v540_v44 = vadd.f32 %v539_v55, %v401_v56  ;;  %v558_v55 = vadd.f32 %v557_v31, %v436_v63  ;;  %v607_v42 = vadd.f32 %v606_v34, %v436_v63  ;;  %v786_v31 = vmul.f32 %v1761_v37, %v584_v36 }
  0xc9   : > { %v589_v46 = vadd.f32 %v588_v60, %v401_v56  ;;  %v782_v56 = vmul.f32 %v1761_v37, %v579_v40  ;;  %v819_v36 = vmul.f32 %v1763_v38, %v555_v41 }
  0xca   : > { %v794_v3 = vmul.f32 %v1771_v54, %v540_v44  ;;  %v834_v34 = vmul.f32 %v1790_v14, %v558_v55  ;;  %v835_v53 = vmul.f32 %v1792_v59, %v607_v42 }
  0xcb   : > { %v795_v9 = vmul.f32 %v1775_v0, %v589_v46 }
  0xcc   : > { %v802_v8 = vadd.f32 %v794_v3, %v781_v12  ;;  %v843_v61 = vadd.f32 %v835_v53, %v822_v51 }
  0xcd   : > { %v559_v1 = vpop.f32.mrf.mxu2  ;;  %v803_v60 = vadd.f32 %v795_v9, %v782_v56  ;;  %v857_v9 = vpop.permute.xlu1 %856 }
  0xce   : > { %v560_v26 = vadd.f32 %v559_v1, %v441_v13  ;;  %v823_v63 = vadd.f32 %v815_v47, %v802_v8  ;;  %v1840_v49 = vadd.f32 %v857_v9, %v843_v61 }
  0xcf   : > { %v608_v17 = vpop.f32.mrf.mxu3  ;;  %v542_v20 = vpop.f32.mrf.mxu0  ;;  %v824_v57 = vadd.f32 %v816_v18, %v803_v60 }
  0xd0   : > { %v609_v27 = vadd.f32 %v608_v17, %v441_v13  ;;  %v591_v28 = vpop.f32.mrf.mxu1  ;;  %v543_v45 = vadd.f32 %v542_v20, %v1733_v7  ;;  %v836_v4 = vmul.f32 %v1790_v14, %v560_v26 }
  0xd1   : > { %v592_v48 = vadd.f32 %v591_v28, %v1733_v7  ;;  %v785_v7 = vmul.f32 %v1754_v32, %v535_v33  ;;  %v867_v28 = vpop.permute.xlu0 %866 }
  0xd2   : > { %v796_v40 = vmul.f32 %v1771_v54, %v543_v45  ;;  %v837_v15 = vmul.f32 %v1792_v59, %v609_v27  ;;  %v844_v56 = vadd.f32 %v836_v4, %v823_v63 }
  0xd3   : > { %v797_v5 = vmul.f32 %v1775_v0, %v592_v48 }
  0xd4   : > { %v804_v43 = vadd.f32 %v796_v40, %v783_v19  ;;  %v845_v1 = vadd.f32 %v837_v15, %v824_v57  ;;  %v842_v19 = vadd.f32 %v834_v34, %v821_v50  ;;  %v1830_v20 = vadd.f32 %v862_v24, %v844_v56 }
  0xd5   : > { %v805_v44 = vadd.f32 %v797_v5, %v784_v23  ;;  %v562_v46 = vpop.f32.mrf.mxu2 }
  0xd6   : > { %v563_v6 = vadd.f32 %v562_v46, %v446_v29  ;;  %v825_v52 = vadd.f32 %v817_v2, %v804_v43  ;;  %v1835_v22 = vadd.f32 %v857_v9, %v842_v19  ;;  %v904_v8 = vmul.f32 %v1830_v20, %v1830_v20 }
  0xd7   : > { %v611_v10 = vpop.f32.mrf.mxu3  ;;  %v544_v37 = vpop.f32.mrf.mxu0  ;;  %v826_v17 = vadd.f32 %v818_v62, %v805_v44 }
  0xd8   : > { %v612_v12 = vadd.f32 %v611_v10, %v446_v29  ;;  %v838_v32 = vmul.f32 %v1790_v14, %v563_v6  ;;  %v593_v3 = vpop.f32.mrf.mxu1  ;;  %v545_v47 = vadd.f32 %v544_v37, %v1745_v16  ;;  %v1832_v29 = vadd.f32 %v862_v24, %v845_v1  ;;  %v872_v62 = vpop.permute.xlu1 %871 }
  0xd9   : > { %v594_v18 = vadd.f32 %v593_v3, %v1745_v16  ;;  %v882_v5 = vadd.f32 %v1830_v20, %v1835_v22 }
  0xda   : > { %v839_v13 = vmul.f32 %v1792_v59, %v612_v12  ;;  %v846_v23 = vadd.f32 %v838_v32, %v825_v52  ;;  %v798_v26 = vmul.f32 %v1771_v54, %v545_v47  ;;  %v820_v54 = vmul.f32 %v1765_v39, %v604_v58 }
  0xdb   : > { %v799_v27 = vmul.f32 %v1775_v0, %v594_v18  ;;  %v905_v38 = vmul.f32 %v1832_v29, %v1832_v29  ;;  %v902_v39 = vmul.f32 %v1835_v22, %v1835_v22  ;;  %v891_v4 = vadd.f32 %v1832_v29, %v1840_v49 }
  0xdc   : > { %v847_v25 = vadd.f32 %v839_v13, %v826_v17  ;;  %v806_v16 = vadd.f32 %v798_v26, %v785_v7  ;;  %v1837_v35 = vadd.f32 %v867_v28, %v846_v23 }
  0xdd   : > { %v807_v33 = vadd.f32 %v799_v27, %v786_v31  ;;  %v564_v21 = vpop.f32.mrf.mxu2  ;;  %v910_v7 = vadd.f32 %v904_v8, %v902_v39  ;;  %v968_v39 = vpop.permute.xlu0 %967 }
  0xde   : > { %v565_v45 = vadd.f32 %v564_v21, %v451_v11  ;;  %v1842_v0 = vadd.f32 %v867_v28, %v847_v25  ;;  %v827_v60 = vadd.f32 %v819_v36, %v806_v16  ;;  %v883_v31 = vadd.f32 %v882_v5, %v1837_v35 }
  0xdf   : > { %v613_v48 = vpop.f32.mrf.mxu3  ;;  %v828_v42 = vadd.f32 %v820_v54, %v807_v33 }
  0xe0   : > { %v614_v55 = vadd.f32 %v613_v48, %v451_v11  ;;  %v840_v30 = vmul.f32 %v1790_v14, %v565_v45  ;;  %v906_v11 = vmul.f32 %v1837_v35, %v1837_v35  ;;  %v903_v14 = vmul.f32 %v1840_v49, %v1840_v49 }
  0xe1   : > { %v892_v46 = vadd.f32 %v891_v4, %v1842_v0 }
  0xe2   : > { %v841_v40 = vmul.f32 %v1792_v59, %v614_v55  ;;  %v848_v2 = vadd.f32 %v840_v30, %v827_v60  ;;  %v907_v59 = vmul.f32 %v1842_v0, %v1842_v0  ;;  %v919_v44 = vadd.f32 %v905_v38, %v903_v14 }
  0xe3   : > { %v911_v63 = vadd.f32 %v910_v7, %v906_v11 }
  0xe4   : > { %v849_v15 = vadd.f32 %v841_v40, %v828_v42  ;;  %v1863_v43 = vadd.f32 %v872_v62, %v848_v2  ;;  %v920_v10 = vadd.f32 %v919_v44, %v907_v59  ;;  %v963_v40 = vpop.permute.xlu2 %962 }
  0xe5   : > { %v1011_v7 = vpop.permute.xlu0 %1010 }
  0xe6   : > { %v1866_v34 = vadd.f32 %v872_v62, %v849_v15  ;;  %v884_v57 = vadd.f32 %v883_v31, %v1863_v43  ;;  %v908_v6 = vmul.f32 %v1863_v43, %v1863_v43  ;;  %v973_v15 = vpop.permute.xlu1 %972 }
  0xe8   : > { %v893_v50 = vadd.f32 %v892_v46, %v1866_v34  ;;  %v909_v51 = vmul.f32 %v1866_v34, %v1866_v34  ;;  %v885_v53 = vrot.slane %v884_v57, 4  ;;  %v912_v12 = vadd.f32 %v911_v63, %v908_v6 }
  0xea   : > { %v894_v56 = vrot.slane %v893_v50, 4  ;;  %v921_v1 = vadd.f32 %v920_v10, %v909_v51  ;;  %v886_v52 = vadd.f32 %v885_v53, %v884_v57  ;;  %v913_v32 = vrot.slane %v912_v12, 4 }
  0xec   : > { %v895_v37 = vadd.f32 %v894_v56, %v893_v50  ;;  %v922_v3 = vrot.slane %v921_v1, 4  ;;  %v887_v9 = vrot.slane %v886_v52, 2  ;;  %v914_v17 = vadd.f32 %v913_v32, %v912_v12  ;;  %v978_v4 = vpop.permute.xlu2 %977 }
  0xee   : > { %v896_v13 = vrot.slane %v895_v37, 2  ;;  %v923_v47 = vadd.f32 %v922_v3, %v921_v1  ;;  %v888_v18 = vadd.f32 %v887_v9, %v886_v52  ;;  %v915_v41 = vrot.slane %v914_v17, 2 }
  0xf0   : > { %v897_v58 = vadd.f32 %v896_v13, %v895_v37  ;;  %v924_v19 = vrot.slane %v923_v47, 2  ;;  %v889_v23 = vrot.slane %v888_v18, 1  ;;  %v916_v24 = vadd.f32 %v915_v41, %v914_v17 }
  0xf2   : > { %v898_v61 = vrot.slane %v897_v58, 1  ;;  %v925_v25 = vadd.f32 %v924_v19, %v923_v47  ;;  %v890_v26 = vadd.f32 %v889_v23, %v888_v18  ;;  %v917_v27 = vrot.slane %v916_v24, 1  ;;  %v1016_v47 = vpop.permute.xlu1 %1015  ;;  %v1026_v18 = vpop.permute.xlu0 %1025 }
  0xf4   : > { %v899_v28 = vadd.f32 %v898_v61, %v897_v58  ;;  %v926_v16 = vrot.slane %v925_v25, 1  ;;  %v900_v33 = vmul.f32 0.03125, %v890_v26  ;;  %v918_v21 = vadd.f32 %v917_v27, %v916_v24  ;;  %v1021_v3 = vpop.permute.xlu2 %1020 }
  0xf6   : > { %v1874_v36 = vmul.f32 0.03125, %v899_v28  ;;  %v927_v45 = vadd.f32 %v926_v16, %v925_v25  ;;  %v928_v48 = vmul.f32 0.03125, %v918_v21  ;;  %v930_v54 = vmul.f32 %v900_v33, %v900_v33  ;;  %v1311_v28 = vld [vmem:[%s1520_s8] sm:$0xff] }
  0xf7   : > { %v988_v6 = vsub.f32 %v1835_v22, %v900_v33  ;;  %v990_v10 = vsub.f32 %v1830_v20, %v900_v33  ;;  %v992_v50 = vsub.f32 %v1837_v35, %v900_v33  ;;  %v994_v12 = vsub.f32 %v1863_v43, %v900_v33  ;;  %v1312_v33 = vld [vmem:[%s1520_s8 + $0x10] sm:$0xff] }
  0xf8   : > { %v929_v55 = vmul.f32 0.03125, %v927_v45  ;;  %v931_v8 = vmul.f32 %v1874_v36, %v1874_v36  ;;  %v932_v60 = vsub.f32 %v928_v48, %v930_v54  ;;  %v989_v56 = vsub.f32 %v1840_v49, %v1874_v36  ;;  %v1314_v48 = vld [vmem:[%s1520_s8 + $0x30] sm:$0xff] }
  0xf9   : > { %v991_v20 = vsub.f32 %v1832_v29, %v1874_v36  ;;  %v993_v35 = vsub.f32 %v1842_v0, %v1874_v36  ;;  %v995_v43 = vsub.f32 %v1866_v34, %v1874_v36  ;;  %v1313_v36 = vld [vmem:[%s1520_s8 + $0x20] sm:$0xff] }
  0xfa   : > { %v933_v30 = vsub.f32 %v929_v55, %v931_v8  ;;  %v934_v38 = vadd.f32 1e-05, %v932_v60 }
  0xfc   : > { %v935_v42 = vadd.f32 1e-05, %v933_v30  ;;  %1307 = vrsqrt.f32 %v934_v38  ;;  %vm942_vm4 = vweird.f32 %v934_v38 }
  0xfe   : > { %1309 = vrsqrt.f32 %v935_v42  ;;  %vm952_vm7 = vweird.f32 %v935_v42 }
 0x102   : > { %v1308_v5 = vpop.eup %1307 }
 0x103   : > { %v937_v2 = vmul.f32 %v1308_v5, %v934_v38  ;;  %vm943_vm3 = vweird.f32 %v1308_v5  ;;  %v1315_v38 = vld [vmem:[%s1520_s8 + $0x8] sm:$0xff] }
 0x104   : > { %v1310_v11 = vpop.eup %1309  ;;  %vm944_vm6 = vmor %vm942_vm4, %vm943_vm3 }
 0x105   : > { %v947_v62 = vmul.f32 %v1310_v11, %v935_v42  ;;  %v938_v14 = vmul.f32 %v1308_v5, %v937_v2  ;;  %vm953_vm5 = vweird.f32 %v1310_v11  ;;  %v1318_v2 = vld [vmem:[%s1520_s8 + $0x38] sm:$0xff] }
 0x106   : > { %vm954_vm8 = vmor %vm952_vm7, %vm953_vm5 }
 0x107   : > { %v948_v59 = vmul.f32 %v1310_v11, %v947_v62  ;;  %v939_v31 = vmul.f32 0.5, %v938_v14 }
 0x109   : > { %v949_v44 = vmul.f32 0.5, %v948_v59  ;;  %v940_v46 = vsub.f32 1.5, %v939_v31 }
 0x10b   : > { %v950_v63 = vsub.f32 1.5, %v949_v44  ;;  %v941_v57 = vmul.f32 %v1308_v5, %v940_v46 }
 0x10d   : > { %v951_v51 = vmul.f32 %v1310_v11, %v950_v63  ;;  %v945_v53 = vsel %vm944_vm6, %v1308_v5, %v941_v57  ;;  %v1317_v5 = vld [vmem:[%s1520_s8 + $0x28] sm:$0xff] }
 0x10e   : > { %v980_v1 = vmul.f32 %v963_v40, %v945_v53  ;;  %v982_v52 = vmul.f32 %v968_v39, %v945_v53  ;;  %v984_v32 = vmul.f32 %v973_v15, %v945_v53  ;;  %v986_v37 = vmul.f32 %v978_v4, %v945_v53 }
 0x10f   : > { %v955_v22 = vsel %vm954_vm8, %v1310_v11, %v951_v51 }
 0x110   : > { %v996_v49 = vmul.f32 %v988_v6, %v980_v1  ;;  %v998_v9 = vmul.f32 %v990_v10, %v982_v52  ;;  %v1000_v17 = vmul.f32 %v992_v50, %v984_v32  ;;  %v1002_v13 = vmul.f32 %v994_v12, %v986_v37 }
 0x111   : > { %v981_v41 = vmul.f32 %v963_v40, %v955_v22  ;;  %v983_v29 = vmul.f32 %v968_v39, %v955_v22  ;;  %v985_v58 = vmul.f32 %v973_v15, %v955_v22  ;;  %v987_v0 = vmul.f32 %v978_v4, %v955_v22  ;;  %v1316_v40 = vld [vmem:[%s1520_s8 + $0x18] sm:$0xff]  ;;  %s1339_s8 = scalar_lea.hbm %s1950_s7, 128 }
 0x112   : > { %v1028_v34 = vadd.f32 %v1011_v7, %v996_v49  ;;  %v1030_v19 = vadd.f32 %v1016_v47, %v998_v9  ;;  %v1032_v23 = vadd.f32 %v1021_v3, %v1000_v17  ;;  %v1034_v24 = vadd.f32 %v1026_v18, %v1002_v13  ;;  %p1341_p2 = scmp.lt.s32.totalorder %s1339_s8, %s1335_s19 }
 0x113   : > { %v997_v61 = vmul.f32 %v989_v56, %v981_v41  ;;  %v999_v25 = vmul.f32 %v991_v20, %v983_v29  ;;  %v1001_v26 = vmul.f32 %v993_v35, %v985_v58  ;;  %v1003_v27 = vmul.f32 %v995_v43, %v987_v0 }
 0x114   : > { %v1036_v16 = vadd.f32 %v1311_v28, %v1028_v34  ;;  %v1038_v21 = vadd.f32 %v1312_v33, %v1030_v19  ;;  %v1040_v45 = vadd.f32 %v1313_v36, %v1032_v23  ;;  %v1042_v54 = vadd.f32 %v1314_v48, %v1034_v24  ;;  %p1342_p3 = por %p1341_p2, %p1340_p1 }
 0x115   : > { %v1029_v55 = vadd.f32 %v1011_v7, %v997_v61  ;;  %v1031_v8 = vadd.f32 %v1016_v47, %v999_v25  ;;  %v1033_v60 = vadd.f32 %v1021_v3, %v1001_v26  ;;  %v1035_v30 = vadd.f32 %v1026_v18, %v1003_v27 }
 0x116   : > { %1044 = vst [vmem:[%s310_s12] sm:$0xff] %v1036_v16  ;;  %p1343_p5 = pnand %p1342_p3, %p1338_p0 }
 0x117   : > { %1046 = vst [vmem:[%s310_s12 + $0x10] sm:$0xff] %v1038_v21  ;;  %v1037_v42 = vadd.f32 %v1315_v38, %v1029_v55  ;;  %v1039_v39 = vadd.f32 %v1316_v40, %v1031_v8  ;;  %v1041_v11 = vadd.f32 %v1317_v5, %v1033_v60  ;;  %v1043_v62 = vadd.f32 %v1318_v2, %v1035_v30 }
 0x118   : > { %1048 = vst [vmem:[%s310_s12 + $0x20] sm:$0xff] %v1040_v45 }
 0x119   : > { %1050 = vst [vmem:[%s310_s12 + $0x30] sm:$0xff] %v1042_v54 }
 0x11a   : > { %1045 = vst [vmem:[%s310_s12 + $0x8] sm:$0xff] %v1037_v42 }
 0x11b   : > { %1047 = vst [vmem:[%s310_s12 + $0x18] sm:$0xff] %v1039_v39 }
 0x11c   : > { %1049 = vst [vmem:[%s310_s12 + $0x28] sm:$0xff] %v1041_v11 }
 0x11d   : > { %1051 = vst [vmem:[%s310_s12 + $0x38] sm:$0xff] %v1043_v62 }
 0x11e   : > { %1346 = shalt.err (!%p1343_p5)
}
 0x11f   : > { %s1406_s21 = smov 256   ;;  %s1407_s30 = smov 16  }
 0x120   : > { %1240 = dma.vmem_to_hbm [thread:$0]  (%p1488_p4), %s1068_s15, 1024, %s1070_s16, %s1053_s17, %s1406_s21, %s1406_s21, %s1407_s30  }
 0x121 PF: > { %p1246_p6 = scmp.ge.s32.totalorder %s1397_s29, 2  ;;  %s1084_s10 = sand.u32 1, %s1377_s24  }
 0x122   : > { %s1085_s12 = scalar_lea.sflag [#allocation3], %s1084_s10 }
 0x123   : > { %p1243_p7 = pnand %p1246_p6, %p1495_p8 }
 0x125   : > { %p1244_p9 = pneg %p1243_p7 }
 0x127   : > { %1372 = dma.done.wait (%p1244_p9), %s1085_s12, 1024  }
 0x128   : > { %1374 = vsyncadd (%p1244_p9), %s1085_s12, 4294966272  ;;  %s20_s29 = sadd.s32 1, %s1397_s29   ;;  %s1955_s24 = smov %s1381_s25 }
 0x129   : > { %p17_p10 = scmp.ge.s32.totalorder %s20_s29, 4   ;;  %s1956_s25 = smov %s1385_s26 }
 0x12a   : > { %s1957_s26 = smov %s1501_s14  ;;  %s1958_s27 = smov %s1393_s28 }
 0x12b   : > { %s1959_s28 = smov %s1961_s9  ;;  %19 = sbr.rel (!%p17_p10) target bundleno = 4 (0x4), region = 86 }
 0x130   :  { %1091 = vsyncpa [#allocation3], 1 }
 0x131   :  { %1093 = vsyncpa [#allocation3 + $0x1], 1 }

</bundles_post_ra>
